<compile_context>
chip_gen: v7x
topology: tpu7x:2x2x1
jax: 0.10.0
libtpu: 0.0.40
codegen_flags: <defaults>
</compile_context>

<pallas_src>
import functools

import jax
import jax.numpy as jnp
import numpy as np
from jax.experimental import pallas as pl
from jax.experimental.pallas import tpu as pltpu

# ----------------------------- model dims ----------------------------------
S_DIM = 16       # state dim
A_DIM = 8        # action dim
H_ENC = 64       # encoder hidden width
HIDDEN = 32      # hidden_dim (encoder output)
LATENT = 8       # latent_dim
H_DEC = 64       # decoder hidden width
MAX_ACTION = 1.0

OUT_W = A_DIM + 2 * LATENT          # packed output: [recon | mean | std]
BIAS_ROWS, BIAS_COLS = 8, 128       # packed bias array (one (8,128) f32 tile)


def _round_up(x, m):
    return ((x + m - 1) // m) * m


# ------------------------------ kernel -------------------------------------
def _vae_kernel(max_action,
                # batch-tiled inputs
                sa_ref, eps_ref,
                # VMEM-resident parameters
                w1_ref, w2_ref, wh_ref, d1_ref, d2_ref, b_ref,
                # packed output
                out_ref):
    sa = sa_ref[...]                          # (bt, S+A) bf16
    biases = b_ref[...]                       # (8, 128)  f32
    b1 = biases[0:1, :H_ENC]
    b2 = biases[1:2, :HIDDEN]
    bh = biases[2:3, :2 * LATENT]
    db1 = biases[3:4, :H_DEC]
    db2 = biases[4:5, :A_DIM]

    # ---- encoder: Linear(S+A -> H_ENC) + ReLU, Linear(H_ENC -> HIDDEN) + ReLU
    h1 = jnp.dot(sa, w1_ref[...], preferred_element_type=jnp.float32)
    h1 = jnp.maximum(h1 + b1, 0.0)
    h2 = jnp.dot(h1.astype(jnp.bfloat16), w2_ref[...],
                 preferred_element_type=jnp.float32)
    h2 = jnp.maximum(h2 + b2, 0.0)

    # ---- fused mean / log_std heads: one dot into [bt, 2*LATENT], then split
    heads = jnp.dot(h2.astype(jnp.bfloat16), wh_ref[...],
                    preferred_element_type=jnp.float32) + bh
    mean = heads[:, :LATENT]
    log_std = jnp.clip(heads[:, LATENT:], -4.0, 15.0)
    std = jnp.exp(log_std)

    # ---- reparameterization: z = mean + std * eps
    z = mean + std * eps_ref[...]

    # ---- decoder: cat([state, z]) realized as in-kernel lane concat -> 1 dot
    s = sa[:, :S_DIM]                                        # bf16
    sz = jnp.concatenate([s, z.astype(jnp.bfloat16)], axis=-1)   # (bt, S+LATENT)
    g1 = jnp.dot(sz, d1_ref[...], preferred_element_type=jnp.float32)
    g1 = jnp.maximum(g1 + db1, 0.0)
    dec = jnp.dot(g1.astype(jnp.bfloat16), d2_ref[...],
                  preferred_element_type=jnp.float32) + db2
    recon = max_action * jnp.tanh(dec)

    # ---- single lane-packed store: [recon | mean | std]
    out_ref[...] = jnp.concatenate([recon, mean, std], axis=-1).astype(out_ref.dtype)


# ------------------------------ wrapper -------------------------------------
def vae_forward(state, action, eps, params, max_action=MAX_ACTION, b_tile=256):
    """Returns (reconstruction, mean, std) — same semantics as VAE.forward."""
    w1, w2, wh, d1, d2, bias_pack = params
    batch = state.shape[0]

    # batch tiling: tile must be a multiple of 8; pad batch up to a tile multiple
    b_tile = _round_up(min(b_tile, _round_up(batch, 8)), 8)
    padded_b = _round_up(batch, b_tile)
    num_tiles = padded_b // b_tile

    sa = jnp.concatenate([state, action], axis=-1).astype(jnp.bfloat16)
    eps = eps.astype(jnp.float32)
    if padded_b != batch:
        pad = padded_b - batch
        sa = jnp.pad(sa, ((0, pad), (0, 0)))
        eps = jnp.pad(eps, ((0, pad), (0, 0)))

    batch_spec = lambda w: pl.BlockSpec((b_tile, w), lambda i: (i, 0))
    const_spec = lambda shape: pl.BlockSpec(shape, lambda i: (0, 0))

    grid_spec = pltpu.PrefetchScalarGridSpec(
        num_scalar_prefetch=0,
        grid=(num_tiles,),
        in_specs=[
            batch_spec(S_DIM + A_DIM),                 # sa        (tiled)
            batch_spec(LATENT),                        # eps       (tiled)
            const_spec((S_DIM + A_DIM, H_ENC)),        # w1        (resident)
            const_spec((H_ENC, HIDDEN)),               # w2        (resident)
            const_spec((HIDDEN, 2 * LATENT)),          # w_heads   (resident)
            const_spec((S_DIM + LATENT, H_DEC)),       # d1        (resident)
            const_spec((H_DEC, A_DIM)),                # d2        (resident)
            const_spec((BIAS_ROWS, BIAS_COLS)),        # bias pack (resident)
        ],
        out_specs=batch_spec(OUT_W),
    )

    out = pl.pallas_call(
        functools.partial(_vae_kernel, float(max_action)),
        out_shape=jax.ShapeDtypeStruct((padded_b, OUT_W), jnp.float32),
        grid_spec=grid_spec,
        compiler_params=pltpu.CompilerParams(
            dimension_semantics=("parallel",)),
    )(sa, eps, w1, w2, wh, d1, d2, bias_pack)

    recon = out[:batch, :A_DIM]
    mean = out[:batch, A_DIM:A_DIM + LATENT]
    std = out[:batch, A_DIM + LATENT:]
    return recon, mean, std


# --------------------------- parameter init ---------------------------------
def _init_linear(key, fan_in, fan_out):
    """PyTorch-style uniform(-1/sqrt(fan_in), 1/sqrt(fan_in)) init."""
    kw, kb = jax.random.split(key)
    bound = 1.0 / np.sqrt(float(fan_in))
    w = jax.random.uniform(kw, (fan_in, fan_out), jnp.float32, -bound, bound)
    b = jax.random.uniform(kb, (fan_out,), jnp.float32, -bound, bound)
    return w, b


def make_params(key):
    keys = jax.random.split(key, 6)
    w1, b1 = _init_linear(keys[0], S_DIM + A_DIM, H_ENC)     # enc layer 1
    w2, b2 = _init_linear(keys[1], H_ENC, HIDDEN)            # enc layer 2
    wm, bm = _init_linear(keys[2], HIDDEN, LATENT)           # mean head
    wls, bls = _init_linear(keys[3], HIDDEN, LATENT)         # log_std head
    d1, db1 = _init_linear(keys[4], S_DIM + LATENT, H_DEC)   # dec layer 1
    d2, db2 = _init_linear(keys[5], H_DEC, A_DIM)            # dec layer 2

    wh = jnp.concatenate([wm, wls], axis=1)                  # fused heads
    bh = jnp.concatenate([bm, bls], axis=0)

    bias_pack = jnp.zeros((BIAS_ROWS, BIAS_COLS), jnp.float32)
    bias_pack = bias_pack.at[0, :H_ENC].set(b1)
    bias_pack = bias_pack.at[1, :HIDDEN].set(b2)
    bias_pack = bias_pack.at[2, :2 * LATENT].set(bh)
    bias_pack = bias_pack.at[3, :H_DEC].set(db1)
    bias_pack = bias_pack.at[4, :A_DIM].set(db2)

    bf16 = lambda x: x.astype(jnp.bfloat16)
    return (bf16(w1), bf16(w2), bf16(wh), bf16(d1), bf16(d2), bias_pack)


# ------------------------- pure-JAX reference --------------------------------
def vae_reference(state, action, eps, params, max_action=MAX_ACTION):
    w1, w2, wh, d1, d2, bp = params
    b1, b2 = bp[0, :H_ENC], bp[1, :HIDDEN]
    bh, db1, db2 = bp[2, :2 * LATENT], bp[3, :H_DEC], bp[4, :A_DIM]
    sa = jnp.concatenate([state, action], -1).astype(jnp.bfloat16)
    h1 = jnp.maximum(jnp.dot(sa, w1, preferred_element_type=jnp.float32) + b1, 0.0)
    h2 = jnp.maximum(jnp.dot(h1.astype(jnp.bfloat16), w2,
                             preferred_element_type=jnp.float32) + b2, 0.0)
    heads = jnp.dot(h2.astype(jnp.bfloat16), wh,
                    preferred_element_type=jnp.float32) + bh
    mean = heads[:, :LATENT]
    std = jnp.exp(jnp.clip(heads[:, LATENT:], -4.0, 15.0))
    z = mean + std * eps
    sz = jnp.concatenate([sa[:, :S_DIM], z.astype(jnp.bfloat16)], -1)
    g1 = jnp.maximum(jnp.dot(sz, d1, preferred_element_type=jnp.float32) + db1, 0.0)
    dec = jnp.dot(g1.astype(jnp.bfloat16), d2,
                  preferred_element_type=jnp.float32) + db2
    return max_action * jnp.tanh(dec), mean, std


if __name__ == "__main__":
    key = jax.random.PRNGKey(0)
    k_state, k_action, k_eps, k_params = jax.random.split(key, 4)

    B = 100  # small demo batch; padded to 128 -> 2 grid steps with b_tile=64
    state = jax.random.normal(k_state, (B, S_DIM), jnp.float32)
    action = jax.random.normal(k_action, (B, A_DIM), jnp.float32)
    # deterministic stand-in for torch.randn_like(std)
    eps = jax.random.normal(k_eps, (B, LATENT), jnp.float32)
    params = make_params(k_params)

    recon, mean, std = vae_forward(state, action, eps, params, b_tile=64)
    jax.block_until_ready((recon, mean, std))

    assert recon.shape == (B, A_DIM)
    assert mean.shape == (B, LATENT)
    assert std.shape == (B, LATENT)

    r_ref, m_ref, s_ref = vae_reference(state, action, eps, params)
    np.testing.assert_allclose(np.asarray(recon), np.asarray(r_ref), rtol=2e-2, atol=2e-2)
    np.testing.assert_allclose(np.asarray(mean), np.asarray(m_ref), rtol=2e-2, atol=2e-2)
    np.testing.assert_allclose(np.asarray(std), np.asarray(s_ref), rtol=2e-2, atol=2e-2)

    print("KERNEL_OK")
</pallas_src>

<mosaic_0001>
module attributes {stable_mosaic.version = 11 : i64} {
  func.func @_vae_kernel(%arg0: i32, %arg1: memref<64x24xbf16, #tpu.memory_space<vmem>>, %arg2: memref<64x8xf32, #tpu.memory_space<vmem>>, %arg3: memref<24x64xbf16, #tpu.memory_space<vmem>>, %arg4: memref<64x32xbf16, #tpu.memory_space<vmem>>, %arg5: memref<32x16xbf16, #tpu.memory_space<vmem>>, %arg6: memref<24x64xbf16, #tpu.memory_space<vmem>>, %arg7: memref<64x8xbf16, #tpu.memory_space<vmem>>, %arg8: memref<8x128xf32, #tpu.memory_space<vmem>>, %arg9: memref<64x24xf32, #tpu.memory_space<vmem>>) attributes {dimension_semantics = [#tpu.dimension_semantics<parallel>], iteration_bounds = array<i64: 2>, scalar_prefetch = 0 : i64, scratch_operands = 0 : i64, tpu.core_type = #tpu.core_type<tc>, window_params = [{transform_indices = @transform_0, window_bounds = array<i64: 64, 24>}, {transform_indices = @transform_1, window_bounds = array<i64: 64, 8>}, {pipeline_mode = #tpu.pipeline_mode<synchronous>, transform_indices = @transform_2, window_bounds = array<i64: 24, 64>}, {pipeline_mode = #tpu.pipeline_mode<synchronous>, transform_indices = @transform_3, window_bounds = array<i64: 64, 32>}, {pipeline_mode = #tpu.pipeline_mode<synchronous>, transform_indices = @transform_4, window_bounds = array<i64: 32, 16>}, {pipeline_mode = #tpu.pipeline_mode<synchronous>, transform_indices = @transform_5, window_bounds = array<i64: 24, 64>}, {pipeline_mode = #tpu.pipeline_mode<synchronous>, transform_indices = @transform_6, window_bounds = array<i64: 64, 8>}, {pipeline_mode = #tpu.pipeline_mode<synchronous>, transform_indices = @transform_7, window_bounds = array<i64: 8, 128>}, {transform_indices = @transform_8, window_bounds = array<i64: 64, 24>}]} {
    %c0 = arith.constant 0 : index
    %c0_0 = arith.constant 0 : index
    %0 = vector.load %arg1[%c0, %c0_0] : memref<64x24xbf16, #tpu.memory_space<vmem>>, vector<64x24xbf16>
    %c0_1 = arith.constant 0 : index
    %c0_2 = arith.constant 0 : index
    %1 = vector.load %arg8[%c0_1, %c0_2] : memref<8x128xf32, #tpu.memory_space<vmem>>, vector<8x128xf32>
    %2 = vector.extract_strided_slice %1 {offsets = [0, 0], sizes = [1, 64], strides = [1, 1]} : vector<8x128xf32> to vector<1x64xf32>
    %3 = vector.extract_strided_slice %1 {offsets = [1, 0], sizes = [1, 32], strides = [1, 1]} : vector<8x128xf32> to vector<1x32xf32>
    %4 = vector.extract_strided_slice %1 {offsets = [2, 0], sizes = [1, 16], strides = [1, 1]} : vector<8x128xf32> to vector<1x16xf32>
    %5 = vector.extract_strided_slice %1 {offsets = [3, 0], sizes = [1, 64], strides = [1, 1]} : vector<8x128xf32> to vector<1x64xf32>
    %6 = vector.extract_strided_slice %1 {offsets = [4, 0], sizes = [1, 8], strides = [1, 1]} : vector<8x128xf32> to vector<1x8xf32>
    %c0_3 = arith.constant 0 : index
    %c0_4 = arith.constant 0 : index
    %7 = vector.load %arg3[%c0_3, %c0_4] : memref<24x64xbf16, #tpu.memory_space<vmem>>, vector<24x64xbf16>
    %cst = arith.constant dense<0.000000e+00> : vector<64x64xf32>
    %8 = tpu.matmul %0, %7, %cst {dimension_numbers = #tpu.dot_dimension_numbers<[1], [0], [0], [1], [0, 0, 1, 1], [], []>} : vector<64x24xbf16>, vector<24x64xbf16>, vector<64x64xf32> -> vector<64x64xf32>
    %9 = vector.broadcast %2 : vector<1x64xf32> to vector<64x64xf32>
    %10 = arith.addf %8, %9 : vector<64x64xf32>
    %cst_5 = arith.constant 0.000000e+00 : f32
    %11 = vector.broadcast %cst_5 : f32 to vector<64x64xf32>
    %12 = arith.maximumf %10, %11 : vector<64x64xf32>
    %13 = arith.truncf %12 : vector<64x64xf32> to vector<64x64xbf16>
    %c0_6 = arith.constant 0 : index
    %c0_7 = arith.constant 0 : index
    %14 = vector.load %arg4[%c0_6, %c0_7] : memref<64x32xbf16, #tpu.memory_space<vmem>>, vector<64x32xbf16>
    %cst_8 = arith.constant dense<0.000000e+00> : vector<64x32xf32>
    %15 = tpu.matmul %13, %14, %cst_8 {dimension_numbers = #tpu.dot_dimension_numbers<[1], [0], [0], [1], [0, 0, 1, 1], [], []>} : vector<64x64xbf16>, vector<64x32xbf16>, vector<64x32xf32> -> vector<64x32xf32>
    %16 = vector.broadcast %3 : vector<1x32xf32> to vector<64x32xf32>
    %17 = arith.addf %15, %16 : vector<64x32xf32>
    %cst_9 = arith.constant 0.000000e+00 : f32
    %18 = vector.broadcast %cst_9 : f32 to vector<64x32xf32>
    %19 = arith.maximumf %17, %18 : vector<64x32xf32>
    %20 = arith.truncf %19 : vector<64x32xf32> to vector<64x32xbf16>
    %c0_10 = arith.constant 0 : index
    %c0_11 = arith.constant 0 : index
    %21 = vector.load %arg5[%c0_10, %c0_11] : memref<32x16xbf16, #tpu.memory_space<vmem>>, vector<32x16xbf16>
    %cst_12 = arith.constant dense<0.000000e+00> : vector<64x16xf32>
    %22 = tpu.matmul %20, %21, %cst_12 {dimension_numbers = #tpu.dot_dimension_numbers<[1], [0], [0], [1], [0, 0, 1, 1], [], []>} : vector<64x32xbf16>, vector<32x16xbf16>, vector<64x16xf32> -> vector<64x16xf32>
    %23 = vector.broadcast %4 : vector<1x16xf32> to vector<64x16xf32>
    %24 = arith.addf %22, %23 : vector<64x16xf32>
    %25 = vector.extract_strided_slice %24 {offsets = [0, 0], sizes = [64, 8], strides = [1, 1]} : vector<64x16xf32> to vector<64x8xf32>
    %26 = vector.extract_strided_slice %24 {offsets = [0, 8], sizes = [64, 8], strides = [1, 1]} : vector<64x16xf32> to vector<64x8xf32>
    %cst_13 = arith.constant -4.000000e+00 : f32
    %cst_14 = arith.constant 1.500000e+01 : f32
    %27 = vector.broadcast %cst_13 : f32 to vector<64x8xf32>
    %28 = arith.maximumf %27, %26 : vector<64x8xf32>
    %29 = vector.broadcast %cst_14 : f32 to vector<64x8xf32>
    %30 = arith.minimumf %29, %28 : vector<64x8xf32>
    %31 = math.exp %30 : vector<64x8xf32>
    %c0_15 = arith.constant 0 : index
    %c0_16 = arith.constant 0 : index
    %32 = vector.load %arg2[%c0_15, %c0_16] : memref<64x8xf32, #tpu.memory_space<vmem>>, vector<64x8xf32>
    %33 = arith.mulf %31, %32 : vector<64x8xf32>
    %34 = arith.addf %25, %33 : vector<64x8xf32>
    %35 = vector.extract_strided_slice %0 {offsets = [0, 0], sizes = [64, 16], strides = [1, 1]} : vector<64x24xbf16> to vector<64x16xbf16>
    %36 = arith.truncf %34 : vector<64x8xf32> to vector<64x8xbf16>
    %37 = tpu.concatenate %35, %36 in 1 : vector<64x16xbf16>, vector<64x8xbf16> -> vector<64x24xbf16>
    %c0_17 = arith.constant 0 : index
    %c0_18 = arith.constant 0 : index
    %38 = vector.load %arg6[%c0_17, %c0_18] : memref<24x64xbf16, #tpu.memory_space<vmem>>, vector<24x64xbf16>
    %cst_19 = arith.constant dense<0.000000e+00> : vector<64x64xf32>
    %39 = tpu.matmul %37, %38, %cst_19 {dimension_numbers = #tpu.dot_dimension_numbers<[1], [0], [0], [1], [0, 0, 1, 1], [], []>} : vector<64x24xbf16>, vector<24x64xbf16>, vector<64x64xf32> -> vector<64x64xf32>
    %40 = vector.broadcast %5 : vector<1x64xf32> to vector<64x64xf32>
    %41 = arith.addf %39, %40 : vector<64x64xf32>
    %cst_20 = arith.constant 0.000000e+00 : f32
    %42 = vector.broadcast %cst_20 : f32 to vector<64x64xf32>
    %43 = arith.maximumf %41, %42 : vector<64x64xf32>
    %44 = arith.truncf %43 : vector<64x64xf32> to vector<64x64xbf16>
    %c0_21 = arith.constant 0 : index
    %c0_22 = arith.constant 0 : index
    %45 = vector.load %arg7[%c0_21, %c0_22] : memref<64x8xbf16, #tpu.memory_space<vmem>>, vector<64x8xbf16>
    %cst_23 = arith.constant dense<0.000000e+00> : vector<64x8xf32>
    %46 = tpu.matmul %44, %45, %cst_23 {dimension_numbers = #tpu.dot_dimension_numbers<[1], [0], [0], [1], [0, 0, 1, 1], [], []>} : vector<64x64xbf16>, vector<64x8xbf16>, vector<64x8xf32> -> vector<64x8xf32>
    %47 = vector.broadcast %6 : vector<1x8xf32> to vector<64x8xf32>
    %48 = arith.addf %46, %47 : vector<64x8xf32>
    %49 = math.tanh %48 : vector<64x8xf32>
    %cst_24 = arith.constant 1.000000e+00 : f32
    %50 = vector.broadcast %cst_24 : f32 to vector<64x8xf32>
    %51 = arith.mulf %50, %49 : vector<64x8xf32>
    %52 = tpu.concatenate %51, %25, %31 in 1 : vector<64x8xf32>, vector<64x8xf32>, vector<64x8xf32> -> vector<64x24xf32>
    %c0_25 = arith.constant 0 : index
    %c0_26 = arith.constant 0 : index
    %53 = vector.load %arg9[%c0_25, %c0_26] : memref<64x24xf32, #tpu.memory_space<vmem>>, vector<64x24xf32>
    tpu.vector_store %arg9[%c0_25, %c0_26], %52 {strides = array<i32>} : memref<64x24xf32, #tpu.memory_space<vmem>>, vector<64x24xf32>,
    return
  }
  func.func @transform_0(%arg0: i32) -> (i32, i32) {
    %c0_i32 = arith.constant 0 : i32
    %c0_i32_0 = arith.constant 0 : i32
    return %arg0, %c0_i32 : i32, i32
  }
  func.func @transform_1(%arg0: i32) -> (i32, i32) {
    %c0_i32 = arith.constant 0 : i32
    %c0_i32_0 = arith.constant 0 : i32
    return %arg0, %c0_i32 : i32, i32
  }
  func.func @transform_2(%arg0: i32) -> (i32, i32) {
    %c0_i32 = arith.constant 0 : i32
    %c0_i32_0 = arith.constant 0 : i32
    %c0_i32_1 = arith.constant 0 : i32
    return %c0_i32, %c0_i32_0 : i32, i32
  }
  func.func @transform_3(%arg0: i32) -> (i32, i32) {
    %c0_i32 = arith.constant 0 : i32
    %c0_i32_0 = arith.constant 0 : i32
    %c0_i32_1 = arith.constant 0 : i32
    return %c0_i32, %c0_i32_0 : i32, i32
  }
  func.func @transform_4(%arg0: i32) -> (i32, i32) {
    %c0_i32 = arith.constant 0 : i32
    %c0_i32_0 = arith.constant 0 : i32
    %c0_i32_1 = arith.constant 0 : i32
    return %c0_i32, %c0_i32_0 : i32, i32
  }
  func.func @transform_5(%arg0: i32) -> (i32, i32) {
    %c0_i32 = arith.constant 0 : i32
    %c0_i32_0 = arith.constant 0 : i32
    %c0_i32_1 = arith.constant 0 : i32
    return %c0_i32, %c0_i32_0 : i32, i32
  }
  func.func @transform_6(%arg0: i32) -> (i32, i32) {
    %c0_i32 = arith.constant 0 : i32
    %c0_i32_0 = arith.constant 0 : i32
    %c0_i32_1 = arith.constant 0 : i32
    return %c0_i32, %c0_i32_0 : i32, i32
  }
  func.func @transform_7(%arg0: i32) -> (i32, i32) {
    %c0_i32 = arith.constant 0 : i32
    %c0_i32_0 = arith.constant 0 : i32
    %c0_i32_1 = arith.constant 0 : i32
    return %c0_i32, %c0_i32_0 : i32, i32
  }
  func.func @transform_8(%arg0: i32) -> (i32, i32) {
    %c0_i32 = arith.constant 0 : i32
    %c0_i32_0 = arith.constant 0 : i32
    return %arg0, %c0_i32 : i32, i32
  }
}

</mosaic_0001>

<bundles_post_ra>
// kernel: tpu_custom_call.1
= control target key start
LH: loop header
LB: loop body
LE: loop exit
PB: predicated region body
PF: predicated region fallthrough
CT: control target
= control target key end

     0   :  { %s1494_s27 = smov 0   ;;  %s1746_s0 = inlined_call_operand.vmem [shape: bf16[128,24], index: 0, kind: input, shape index: {}]   ;;  %s1747_s1 = inlined_call_operand.vmem [shape: f32[128,8], index: 1, kind: input, shape index: {}]   ;;  %s1748_s2 = inlined_call_operand.vmem [shape: bf16[24,64], index: 2, kind: input, shape index: {}]   ;;  %s1749_s3 = inlined_call_operand.vmem [shape: bf16[64,32], index: 3, kind: input, shape index: {}]   ;;  %s1750_s4 = inlined_call_operand.vmem [shape: bf16[32,16], index: 4, kind: input, shape index: {}]   ;;  %s1751_s5 = inlined_call_operand.vmem [shape: bf16[24,64], index: 5, kind: input, shape index: {}]   ;;  %s1752_s6 = inlined_call_operand.vmem [shape: bf16[64,8], index: 6, kind: input, shape index: {}]   ;;  %s1753_s7 = inlined_call_operand.vmem [shape: f32[8,128], index: 7, kind: input, shape index: {}]   ;;  %s1754_s8 = inlined_call_operand.vmem [shape: f32[128,24], index: 8, kind: output, shape index: {}]  }
   0x1 LB: > { %s1222_s28 = sadd.s32 4294967295, %s1444_s27   ;;  %p1226_p0 = scmp.ge.s32.totalorder %s1444_s27, 1  ;;  %s1444_s27 = sphi %s1494_s27, %s18_s27  }
   0x2   : > { %p274_p1 = scmp.lt.s32.totalorder %s1444_s27, 3 }
   0x4   : > { %p275_p2 = pnand %p1226_p0, %p274_p1 }
   0x5   : > { %v1388_v0 = vld [vmem:[%s1748_s2] sm:$0xff] (!%p275_p2)   ;;  %v1389_v1 = vld [vmem:[%s1748_s2 + $0x8] ss:$0 sps:$4 sm:$0xff] (!%p275_p2)   ;;  %vm390_vm0 = vcmask (!%p275_p2), 1043456   ;;  %s1227_s11 = sshll.u32 (!%p275_p2), %s1222_s28, 3  ;;  %vm377_vm1 = vcmask (!%p275_p2), 195584   ;;  %v344_v12 = vlaneseq (!%p275_p2) }
   0x6   : > { %278 = sbr.rel (%p275_p2) target bundleno = 1398 (0x576), region = 52  ;;  %1307 = vmatprep.subr.bf16.mxu0 (!%p275_p2), %v1388_v0  ;;  %p314_p3 = scmp.lt.s32.totalorder (!%p275_p2), %s1227_s11, 15  ;;  %v1394_v2 = vld [vmem:[%s1749_s3] sm:$0xff] (!%p275_p2)   ;;  %v1395_v3 = vld [vmem:[%s1749_s3 + $0x8] sm:$0xff] (!%p275_p2)   ;;  %v392_v4 = vsel (!%p275_p2), %vm390_vm0, %v1389_v1, 0  ;;  %v1396_v9 = vld [vmem:[%s1749_s3 + $0x10] sm:$0xff] (!%p275_p2)  }
   0x7   : > { %1308 = vmatpush3.bf16.msra.mxu0 (!%p275_p2), %v1388_v0  ;;  %1319 = vmatprep.subr.bf16.mxu1 (!%p275_p2), %v1394_v2  ;;  %v1397_v10 = vld [vmem:[%s1749_s3 + $0x18] sm:$0xff] (!%p275_p2)   ;;  %v1398_v11 = vld [vmem:[%s1750_s4] sm:$0xff] (!%p275_p2)   ;;  %v1547_v13 = vshrl.u32 (!%p275_p2), %v344_v12, 7  ;;  %vm507_vm2 = vcmask (!%p275_p2), 523264   ;;  %v1399_v45 = vld [vmem:[%s1750_s4 + $0x8] sm:$0xff] (!%p275_p2)   ;;  %s1446_s14 = smov (!%p275_p2), 8  }
   0x8   : > { %1375 = vmatprep.subr.msk.bf16.mxu0 (!%p275_p2), %vm390_vm0, %v1389_v1  ;;  %1320 = vmatpush3.bf16.msra.mxu1 (!%p275_p2), %v1394_v2  ;;  %v1553_v15 = vld [vmem:[%s1753_s7] sm:$0xff] (!%p275_p2)  ;;  %vm617_vm3 = vcmask (!%p275_p2), 261120   ;;  %s1447_s15 = smov (!%p275_p2), 120   ;;  %s1448_s20 = smov (!%p275_p2), 16   ;;  %vm831_vm4 = vcmask (!%p275_p2), 130048   ;;  %vm1129_vm5 = vcmask (!%p275_p2), 64512  }
   0x9   : > { %1321 = vmatprep.subr.bf16.mxu1 (!%p275_p2), %v1395_v3  ;;  %v346_v14 = vsub.s32 (!%p275_p2), 0, %v1547_v13  ;;  %v481_v54 = vsub.s32 (!%p275_p2), 1, %v1547_v13 }
   0xb   : > { %1310 = vmatpush3.bf16.msra.mxu0 (!%p275_p2), %v392_v4  ;;  %v347_v16 = vrot.slane (!%p275_p2), %v1553_v15, %v346_v14  ;;  %v482_v55 = vrot.slane (!%p275_p2), %v1553_v15, %v481_v54 }
   0xc   : > { %1322 = vmatpush3.bf16.msra.mxu1 (!%p275_p2), %v1395_v3  ;;  %1335 = vmatprep.subr.bf16.mxu0 (!%p275_p2), %v1398_v11 }
   0xd   : > { %s1756_s11 = smov (!%p314_p3, %s1227_s11), 15  ;;  %1323 = vmatprep.subr.bf16.mxu1 %v1396_v9 }
   0xe   : > { %s1228_s16 = sshll.u32 %s1756_s11, 2  ;;  %s1230_s9 = sshll.u32 %s1756_s11, 3 }
   0xf   : > { %s317_s19 = scalar_lea.vmem %s1746_s0, %s1228_s16  ;;  %s323_s13 = scalar_lea.vmem %s1747_s1, %s1230_s9 }
  0x10   : > { %v1522_v5 = vld [vmem:[%s317_s19] sm:$0xff]   ;;  %v1524_v6 = vld [vmem:[%s317_s19 + $0x8] sm:$0xff]   ;;  %v1528_v7 = vld [vmem:[%s317_s19 + $0x10] sm:$0xff]   ;;  %1324 = vmatpush3.bf16.msra.mxu1 %v1396_v9  ;;  %s1708_s12 = scalar_lea.vmem %s1754_s8, %s1230_s9 }
  0x11   : > { %1311 = vmatprep.mubr.msk.bf16.mxu0 %vm377_vm1, %v1522_v5  ;;  %v1534_v8 = vld [vmem:[%s317_s19 + $0x18] sm:$0xff]   ;;  %1325 = vmatprep.subr.bf16.mxu1 %v1397_v10  ;;  %v727_v46 = vld [vmem:[%s323_s13] sm:$0xff]  ;;  %v729_v47 = vld [vmem:[%s323_s13 + $0x10] sm:$0xff] }
  0x12   : > { %1312 = vmatmul.mubr.msk.bf16.vlgmr.msra.gmra.mrb[0].mxu0 %vm377_vm1, %v1524_v6  ;;  %743 = vrot.lane.b32.xlu0 %v727_v46, %s1446_s14  ;;  %v728_v48 = vld [vmem:[%s323_s13 + $0x8] sm:$0xff]  ;;  %v730_v49 = vld [vmem:[%s323_s13 + $0x18] sm:$0xff]  ;;  %v731_v50 = vld [vmem:[%s323_s13 + $0x20] sm:$0xff] }
  0x13   : > { %1315 = vmatprep.mubr.msk.bf16.mxu0 %vm377_vm1, %v1528_v7  ;;  %1336 = vmatpush3.bf16.msra.mxu0 %v1398_v11  ;;  %v732_v51 = vld [vmem:[%s323_s13 + $0x28] sm:$0xff]  ;;  %v733_v52 = vld [vmem:[%s323_s13 + $0x30] sm:$0xff]  ;;  %v734_v53 = vld [vmem:[%s323_s13 + $0x38] sm:$0xff] }
  0x14   : > { %1326 = vmatpush3.bf16.msra.mxu1 %v1397_v10  ;;  %1337 = vmatprep.subr.bf16.mxu0 %v1399_v45 }
  0x15   : > { %747 = vrot.lane.b32.xlu1 %v729_v47, %s1446_s14 }
  0x16   : > { %745 = vrot.lane.b32.xlu0 %v728_v48, %s1446_s14 }
  0x17   : > { %1338 = vmatpush3.bf16.msra.mxu0 %v1399_v45 }
  0x19   : > { %749 = vrot.lane.b32.xlu1 %v730_v49, %s1446_s14 }
  0x1a   : > { %1316 = vmatmul.mubr.msk.bf16.gmra.mrb[4].mxu0 %vm377_vm1, %v1534_v8  ;;  %751 = vrot.lane.b32.xlu0 %v731_v50, %s1446_s14 }
  0x1d   : > { %753 = vrot.lane.b32.xlu1 %v732_v51, %s1446_s14 }
  0x1e   : > { %755 = vrot.lane.b32.xlu0 %v733_v52, %s1446_s14 }
  0x21   : > { %757 = vrot.lane.b32.xlu1 %v734_v53, %s1446_s14 }
  0xe5   : > { %v1313_v17 = vpop.f32.mrb[0].mxu0 }
  0xe6   : > { %v437_v18 = vadd.f32 %v1313_v17, %v347_v16  ;;  %v428_v19 = vpop.f32.mrb[1].mxu0 }
  0xe7   : > { %v429_v20 = vadd.f32 %v428_v19, %v347_v16  ;;  %v1314_v21 = vpop.f32.mrb[2].mxu0 }
  0xe8   : > { %v440_v22 = vadd.f32 %v1314_v21, %v347_v16  ;;  %v431_v23 = vpop.f32.mrb[3].mxu0  ;;  %v461_v25 = vmax.f32 %v437_v18, 0.0 }
  0xe9   : > { %v432_v24 = vadd.f32 %v431_v23, %v347_v16  ;;  %v459_v27 = vmax.f32 %v429_v20, 0.0 }
  0xea   : > { %v462_v26 = vmax.f32 %v440_v22, 0.0 }
  0xeb   : > { %v460_v28 = vmax.f32 %v432_v24, 0.0 }
  0xec   : > { %v468_v29 = vpack.c.bf16 %v462_v26, %v461_v25  ;;  %v603_v26 = vsub.s32 2, %v1547_v13 }
  0xed   : > { %v1317_v30 = vpop.f32.mrb[4].mxu0  ;;  %v467_v31 = vpack.c.bf16 %v460_v28, %v459_v27 }
  0xee   : > { %v453_v32 = vadd.f32 %v1317_v30, %v347_v16  ;;  %v444_v33 = vpop.f32.mrb[5].mxu0  ;;  %v604_v27 = vrot.slane %v1553_v15, %v603_v26 }
  0xef   : > { %v445_v34 = vadd.f32 %v444_v33, %v347_v16  ;;  %v1318_v35 = vpop.f32.mrb[6].mxu0  ;;  %1327 = vmatprep.mubr.msk.bf16.mxu1 %vm507_vm2, %v467_v31 }
  0xf0   : > { %v456_v36 = vadd.f32 %v1318_v35, %v347_v16  ;;  %v447_v37 = vpop.f32.mrb[7].mxu0  ;;  %1328 = vmatmul.mubr.msk.bf16.vlgmr.msra.gmra.mrb[0].mxu1 %vm507_vm2, %v468_v29  ;;  %v465_v39 = vmax.f32 %v453_v32, 0.0 }
  0xf1   : > { %v448_v38 = vadd.f32 %v447_v37, %v347_v16  ;;  %v463_v41 = vmax.f32 %v445_v34, 0.0 }
  0xf2   : > { %v466_v40 = vmax.f32 %v456_v36, 0.0 }
  0xf3   : > { %v464_v42 = vmax.f32 %v448_v38, 0.0 }
  0xf4   : > { %v470_v43 = vpack.c.bf16 %v466_v40, %v465_v39 }
  0xf5   : > { %v469_v44 = vpack.c.bf16 %v464_v42, %v463_v41 }
  0xf7   : > { %1331 = vmatprep.mubr.msk.bf16.mxu1 %vm507_vm2, %v469_v44 }
  0xf8   : > { %1332 = vmatmul.mubr.msk.bf16.gmra.mrb[4].mxu1 %vm507_vm2, %v470_v43 }
 0x1c3   : > { %v1329_v56 = vpop.f32.mrb[0].mxu1 }
 0x1c4   : > { %v563_v57 = vadd.f32 %v1329_v56, %v482_v55  ;;  %v554_v58 = vpop.f32.mrb[1].mxu1 }
 0x1c5   : > { %v555_v59 = vadd.f32 %v554_v58, %v482_v55  ;;  %v1330_v60 = vpop.f32.mrb[2].mxu1  ;;  %v744_v58 = vpop.permute.xlu0 %743 }
 0x1c6   : > { %v566_v61 = vadd.f32 %v1330_v60, %v482_v55  ;;  %v557_v62 = vpop.f32.mrb[3].mxu1  ;;  %v587_v0 = vmax.f32 %v563_v57, 0.0 }
 0x1c7   : > { %v558_v63 = vadd.f32 %v557_v62, %v482_v55  ;;  %v585_v2 = vmax.f32 %v555_v59, 0.0 }
 0x1c8   : > { %v588_v1 = vmax.f32 %v566_v61, 0.0 }
 0x1c9   : > { %v586_v3 = vmax.f32 %v558_v63, 0.0  ;;  %v748_v63 = vpop.permute.xlu1 %747 }
 0x1ca   : > { %v594_v4 = vpack.c.bf16 %v588_v1, %v587_v0 }
 0x1cb   : > { %v593_v9 = vpack.c.bf16 %v586_v3, %v585_v2  ;;  %v1333_v10 = vpop.f32.mrb[4].mxu1 }
 0x1cc   : > { %v579_v11 = vadd.f32 %v1333_v10, %v482_v55  ;;  %v570_v12 = vpop.f32.mrb[5].mxu1  ;;  %v746_v10 = vpop.permute.xlu0 %745 }
 0x1cd   : > { %v571_v14 = vadd.f32 %v570_v12, %v482_v55  ;;  %v1334_v16 = vpop.f32.mrb[6].mxu1  ;;  %1339 = vmatprep.mubr.msk.bf16.mxu0 %vm617_vm3, %v593_v9  ;;  %v750_v12 = vpop.permute.xlu1 %749 }
 0x1ce   : > { %v582_v17 = vadd.f32 %v1334_v16, %v482_v55  ;;  %v573_v18 = vpop.f32.mrb[7].mxu1  ;;  %1340 = vmatmul.mubr.msk.bf16.vlgmr.msra.gmra.mrb[8].mxu0 %vm617_vm3, %v594_v4  ;;  %v591_v20 = vmax.f32 %v579_v11, 0.0 }
 0x1cf   : > { %v574_v19 = vadd.f32 %v573_v18, %v482_v55  ;;  %v589_v22 = vmax.f32 %v571_v14, 0.0 }
 0x1d0   : > { %v592_v21 = vmax.f32 %v582_v17, 0.0 }
 0x1d1   : > { %v590_v23 = vmax.f32 %v574_v19, 0.0 }
 0x1d2   : > { %v596_v24 = vpack.c.bf16 %v592_v21, %v591_v20  ;;  %v752_v20 = vpop.permute.xlu0 %751 }
 0x1d3   : > { %v595_v25 = vpack.c.bf16 %v590_v23, %v589_v22  ;;  %v754_v22 = vpop.permute.xlu1 %753 }
 0x1d5   : > { %1343 = vmatprep.mubr.msk.bf16.mxu0 %vm617_vm3, %v595_v25 }
 0x1d6   : > { %1344 = vmatmul.mubr.msk.bf16.gmra.mrb[12].mxu0 %vm617_vm3, %v596_v24 }
 0x2a1   : > { %v1341_v28 = vpop.f32.mrb[8].mxu0 }
 0x2a2   : > { %v1585_v29 = vadd.f32 %v1341_v28, %v604_v27  ;;  %v664_v30 = vpop.f32.mrb[9].mxu0  ;;  %v756_v28 = vpop.permute.xlu0 %755 }
 0x2a3   : > { %v1587_v31 = vadd.f32 %v664_v30, %v604_v27  ;;  %v1342_v32 = vpop.f32.mrb[10].mxu0 }
 0x2a4   : > { %v697_v33 = vmax.f32 %v1585_v29, -4.0  ;;  %v1590_v34 = vadd.f32 %v1342_v32, %v604_v27  ;;  %v667_v35 = vpop.f32.mrb[11].mxu0 }
 0x2a5   : > { %v695_v36 = vmax.f32 %v1587_v31, -4.0  ;;  %v1593_v37 = vadd.f32 %v667_v35, %v604_v27 }
 0x2a6   : > { %v705_v38 = vmin.f32 %v697_v33, 15.0  ;;  %v698_v39 = vmax.f32 %v1590_v34, -4.0  ;;  %v758_v33 = vpop.permute.xlu1 %757 }
 0x2a7   : > { %v703_v40 = vmin.f32 %v695_v36, 15.0  ;;  %v696_v41 = vmax.f32 %v1593_v37, -4.0 }
 0x2a8   : > { %v715_v42 = vmul.f32 1.442695, %v705_v38  ;;  %v706_v43 = vmin.f32 %v698_v39, 15.0  ;;  %v1400_v38 = vld [vmem:[%s1751_s5] sm:$0xff]   ;;  %v1401_v39 = vld [vmem:[%s1751_s5 + $0x8] ss:$0 sps:$4 sm:$0xff]  }
 0x2a9   : > { %v711_v44 = vmul.f32 1.442695, %v703_v40  ;;  %v704_v45 = vmin.f32 %v696_v41, 15.0  ;;  %v1345_v46 = vpop.f32.mrb[12].mxu0  ;;  %1347 = vmatprep.subr.bf16.mxu1 %v1400_v38  ;;  %v865_v40 = vsel %vm390_vm0, %v1401_v39, 0 }
 0x2aa   : > { %v1597_v47 = vadd.f32 %v1345_v46, %v604_v27  ;;  %v680_v48 = vpop.f32.mrb[13].mxu0  ;;  %v717_v49 = vmul.f32 1.442695, %v706_v43  ;;  %1348 = vmatpush3.bf16.msra.mxu1 %v1400_v38 }
 0x2ab   : > { %1406 = vpow2.f32 %v711_v44  ;;  %v713_v50 = vmul.f32 1.442695, %v704_v45  ;;  %v1599_v51 = vadd.f32 %v680_v48, %v604_v27  ;;  %v1346_v52 = vpop.f32.mrb[14].mxu0  ;;  %1376 = vmatprep.subr.msk.bf16.mxu1 %vm390_vm0, %v1401_v39 }
 0x2ac   : > { %1408 = vpow2.f32 %v715_v42  ;;  %v701_v53 = vmax.f32 %v1597_v47, -4.0  ;;  %v1602_v54 = vadd.f32 %v1346_v52, %v604_v27  ;;  %v683_v55 = vpop.f32.mrb[15].mxu0 }
 0x2ad   : > { %1410 = vpow2.f32 %v713_v50  ;;  %v699_v56 = vmax.f32 %v1599_v51, -4.0  ;;  %v1605_v57 = vadd.f32 %v683_v55, %v604_v27 }
 0x2ae   : > { %v709_v59 = vmin.f32 %v701_v53, 15.0  ;;  %v702_v60 = vmax.f32 %v1602_v54, -4.0  ;;  %1412 = vpow2.f32 %v717_v49  ;;  %1350 = vmatpush3.bf16.msra.mxu1 %v865_v40 }
 0x2af   : > { %v707_v61 = vmin.f32 %v699_v56, 15.0  ;;  %v700_v62 = vmax.f32 %v1605_v57, -4.0 }
 0x2b0   : > { %v723_v0 = vmul.f32 1.442695, %v709_v59  ;;  %v710_v1 = vmin.f32 %v702_v60, 15.0 }
 0x2b1   : > { %v719_v2 = vmul.f32 1.442695, %v707_v61  ;;  %v708_v3 = vmin.f32 %v700_v62, 15.0 }
 0x2b2   : > { %v725_v4 = vmul.f32 1.442695, %v710_v1 }
 0x2b3   : > { %1414 = vpow2.f32 %v719_v2  ;;  %v721_v9 = vmul.f32 1.442695, %v708_v3 }
 0x2b4   : > { %1416 = vpow2.f32 %v723_v0 }
 0x2b5   : > { %v1609_v11 = vpop.eup %1406  ;;  %1418 = vpow2.f32 %v721_v9 }
 0x2b6   : > { %v1611_v14 = vpop.eup %1408  ;;  %v767_v16 = vmul.f32 %v1609_v11, %v744_v58  ;;  %1420 = vpow2.f32 %v725_v4 }
 0x2b7   : > { %v1614_v17 = vpop.eup %1410  ;;  %v769_v21 = vmul.f32 %v1611_v14, %v748_v63 }
 0x2b8   : > { %v768_v18 = vmul.f32 %v1614_v17, %v746_v10  ;;  %783 = vrot.lane.b32.xlu0 %v767_v16, %s1447_s15  ;;  %v1617_v19 = vpop.eup %1412 }
 0x2b9   : > { %v770_v23 = vmul.f32 %v1617_v19, %v750_v12 }
 0x2ba   : > { %785 = vrot.lane.b32.xlu1 %v768_v18, %s1447_s15 }
 0x2bc   : > { %787 = vrot.lane.b32.xlu0 %v769_v21, %s1447_s15 }
 0x2bd   : > { %v1415_v24 = vpop.eup %1414 }
 0x2be   : > { %v1621_v25 = vpop.eup %1416  ;;  %v771_v26 = vmul.f32 %v1415_v24, %v752_v20  ;;  %789 = vrot.lane.b32.xlu1 %v770_v23, %s1447_s15 }
 0x2bf   : > { %v1419_v27 = vpop.eup %1418  ;;  %v773_v35 = vmul.f32 %v1621_v25, %v756_v28 }
 0x2c0   : > { %v772_v30 = vmul.f32 %v1419_v27, %v754_v22  ;;  %791 = vrot.lane.b32.xlu0 %v771_v26, %s1447_s15  ;;  %v1421_v32 = vpop.eup %1420 }
 0x2c1   : > { %v774_v36 = vmul.f32 %v1421_v32, %v758_v33 }
 0x2c2   : > { %793 = vrot.lane.b32.xlu1 %v772_v30, %s1447_s15 }
 0x2c4   : > { %795 = vrot.lane.b32.xlu0 %v773_v35, %s1447_s15 }
 0x2c6   : > { %797 = vrot.lane.b32.xlu1 %v774_v36, %s1447_s15 }
 0x32a   : > { %v784_v41 = vpop.permute.xlu0 %783 }
 0x32b   : > { %v807_v43 = vadd.f32 %v784_v41, %v1587_v31 }
 0x32c   : > { %v786_v42 = vpop.permute.xlu1 %785 }
 0x32d   : > { %v808_v44 = vadd.f32 %v786_v42, %v1593_v37 }
 0x32e   : > { %v788_v45 = vpop.permute.xlu0 %787 }
 0x32f   : > { %v815_v46 = vpack.c.bf16 %v808_v44, %v807_v43  ;;  %v809_v49 = vadd.f32 %v788_v45, %v1585_v29 }
 0x330   : > { %v790_v48 = vpop.permute.xlu1 %789 }
 0x331   : > { %v810_v50 = vadd.f32 %v790_v48, %v1590_v34  ;;  %823 = vrot.lane.b32.xlu0 %v815_v46, %s1448_s20  ;;  %v954_v46 = vsub.s32 4, %v1547_v13 }
 0x332   : > { %v792_v52 = vpop.permute.xlu0 %791 }
 0x333   : > { %v816_v53 = vpack.c.bf16 %v810_v50, %v809_v49  ;;  %v811_v56 = vadd.f32 %v792_v52, %v1599_v51  ;;  %v955_v49 = vrot.slane %v1553_v15, %v954_v46 }
 0x334   : > { %v794_v55 = vpop.permute.xlu1 %793 }
 0x335   : > { %v812_v58 = vadd.f32 %v794_v55, %v1605_v57  ;;  %825 = vrot.lane.b32.xlu1 %v816_v53, %s1448_s20 }
 0x336   : > { %v796_v59 = vpop.permute.xlu0 %795 }
 0x337   : > { %v817_v60 = vpack.c.bf16 %v812_v58, %v811_v56  ;;  %v813_v62 = vadd.f32 %v796_v59, %v1597_v47 }
 0x338   : > { %v798_v61 = vpop.permute.xlu1 %797 }
 0x339   : > { %v814_v63 = vadd.f32 %v798_v61, %v1602_v54  ;;  %827 = vrot.lane.b32.xlu0 %v817_v60, %s1448_s20 }
 0x33b   : > { %v818_v0 = vpack.c.bf16 %v814_v63, %v813_v62 }
 0x33d   : > { %1073 = vrot.lane.b32.xlu0 %v1587_v31, %s1446_s14  ;;  %829 = vrot.lane.b32.xlu1 %v818_v0, %s1448_s20  ;;  %v1403_v31 = vld [vmem:[%s1752_s6 + $0x8] sm:$0xff]  }
 0x341   : > { %1077 = vrot.lane.b32.xlu0 %v1585_v29, %s1446_s14  ;;  %1075 = vrot.lane.b32.xlu1 %v1593_v37, %s1446_s14  ;;  %v1402_v29 = vld [vmem:[%s1752_s6] sm:$0xff]  }
 0x342   : > { %1359 = vmatprep.subr.bf16.mxu0 %v1402_v29 }
 0x343   : > { %1360 = vmatpush3.bf16.msra.mxu0 %v1402_v29 }
 0x344   : > { %1361 = vmatprep.subr.bf16.mxu0 %v1403_v31 }
 0x345   : > { %1081 = vrot.lane.b32.xlu0 %v1599_v51, %s1446_s14  ;;  %1079 = vrot.lane.b32.xlu1 %v1590_v34, %s1446_s14 }
 0x347   : > { %1362 = vmatpush3.bf16.msra.mxu0 %v1403_v31 }
 0x349   : > { %1085 = vrot.lane.b32.xlu0 %v1597_v47, %s1446_s14  ;;  %1083 = vrot.lane.b32.xlu1 %v1605_v57, %s1446_s14 }
 0x34d   : > { %1105 = vrot.lane.b32.xlu0 %v1609_v11, %s1446_s14  ;;  %1087 = vrot.lane.b32.xlu1 %v1602_v54, %s1446_s14 }
 0x351   : > { %1109 = vrot.lane.b32.xlu0 %v1611_v14, %s1446_s14  ;;  %1107 = vrot.lane.b32.xlu1 %v1614_v17, %s1446_s14 }
 0x355   : > { %1113 = vrot.lane.b32.xlu0 %v1415_v24, %s1446_s14  ;;  %1111 = vrot.lane.b32.xlu1 %v1617_v19, %s1446_s14 }
 0x359   : > { %1117 = vrot.lane.b32.xlu0 %v1621_v25, %s1446_s14  ;;  %1115 = vrot.lane.b32.xlu1 %v1419_v27, %s1446_s14 }
 0x35d   : > { %1119 = vrot.lane.b32.xlu1 %v1421_v32, %s1446_s14 }
 0x3a3   : > { %v824_v34 = vpop.permute.xlu0 %823 }
 0x3a4   : > { %v833_v37 = vsel %vm831_vm4, %v1522_v5, %v824_v34  ;;  %v1404_v5 = vld [vmem:[%s1752_s6 + $0x10] sm:$0xff]  }
 0x3a5   : > { %1351 = vmatprep.mubr.msk.bf16.mxu1 %vm377_vm1, %v833_v37  ;;  %1363 = vmatprep.subr.bf16.mxu0 %v1404_v5 }
 0x3a6   : > { %1364 = vmatpush3.bf16.msra.mxu0 %v1404_v5 }
 0x3a7   : > { %v826_v47 = vpop.permute.xlu1 %825 }
 0x3a8   : > { %v835_v51 = vsel %vm831_vm4, %v1524_v6, %v826_v47  ;;  %v1405_v6 = vld [vmem:[%s1752_s6 + $0x18] sm:$0xff]  }
 0x3a9   : > { %1352 = vmatmul.mubr.msk.bf16.vlgmr.msra.gmra.mrb[8].mxu1 %vm377_vm1, %v835_v51  ;;  %1365 = vmatprep.subr.bf16.mxu0 %v1405_v6 }
 0x3aa   : > { %1366 = vmatpush3.bf16.msra.mxu0 %v1405_v6 }
 0x3ab   : > { %v828_v54 = vpop.permute.xlu0 %827 }
 0x3ac   : > { %v837_v57 = vsel %vm831_vm4, %v1528_v7, %v828_v54  ;;  %v845_v7 = vsub.s32 3, %v1547_v13 }
 0x3ad   : > { %1355 = vmatprep.mubr.msk.bf16.mxu1 %vm377_vm1, %v837_v57 }
 0x3ae   : > { %v846_v3 = vrot.slane %v1553_v15, %v845_v7 }
 0x3af   : > { %v830_v1 = vpop.permute.xlu1 %829  ;;  %v1074_v41 = vpop.permute.xlu0 %1073 }
 0x3b0   : > { %v839_v2 = vsel %vm831_vm4, %v1534_v8, %v830_v1 }
 0x3b1   : > { %1356 = vmatmul.mubr.msk.bf16.gmra.mrb[12].mxu1 %vm377_vm1, %v839_v2 }
 0x3b3   : > { %v1076_v42 = vpop.permute.xlu1 %1075  ;;  %v1078_v43 = vpop.permute.xlu0 %1077 }
 0x3b7   : > { %v1080_v44 = vpop.permute.xlu1 %1079  ;;  %v1082_v45 = vpop.permute.xlu0 %1081 }
 0x3bb   : > { %v1700_v48 = vpop.permute.xlu1 %1083  ;;  %v1086_v50 = vpop.permute.xlu0 %1085 }
 0x3bf   : > { %v1088_v52 = vpop.permute.xlu1 %1087  ;;  %v1106_v62 = vpop.permute.xlu0 %1105 }
 0x3c3   : > { %v1108_v0 = vpop.permute.xlu1 %1107  ;;  %v1110_v31 = vpop.permute.xlu0 %1109 }
 0x3c7   : > { %v1112_v54 = vpop.permute.xlu1 %1111 }
 0x47c   : > { %v1353_v4 = vpop.f32.mrb[8].mxu1 }
 0x47d   : > { %v910_v8 = vadd.f32 %v1353_v4, %v846_v3  ;;  %v901_v9 = vpop.f32.mrb[9].mxu1 }
 0x47e   : > { %v902_v10 = vadd.f32 %v901_v9, %v846_v3  ;;  %v1354_v11 = vpop.f32.mrb[10].mxu1 }
 0x47f   : > { %v913_v12 = vadd.f32 %v1354_v11, %v846_v3  ;;  %v904_v14 = vpop.f32.mrb[11].mxu1  ;;  %v934_v17 = vmax.f32 %v910_v8, 0.0  ;;  %v1114_v8 = vpop.permute.xlu0 %1113 }
 0x480   : > { %v905_v16 = vadd.f32 %v904_v14, %v846_v3  ;;  %v932_v19 = vmax.f32 %v902_v10, 0.0  ;;  %v1116_v14 = vpop.permute.xlu1 %1115 }
 0x481   : > { %v935_v18 = vmax.f32 %v913_v12, 0.0 }
 0x482   : > { %v933_v20 = vmax.f32 %v905_v16, 0.0 }
 0x483   : > { %v941_v21 = vpack.c.bf16 %v935_v18, %v934_v17 }
 0x484   : > { %v940_v22 = vpack.c.bf16 %v933_v20, %v932_v19  ;;  %v1357_v23 = vpop.f32.mrb[12].mxu1  ;;  %v1118_v19 = vpop.permute.xlu0 %1117 }
 0x485   : > { %v926_v24 = vadd.f32 %v1357_v23, %v846_v3  ;;  %v917_v25 = vpop.f32.mrb[13].mxu1 }
 0x486   : > { %v918_v26 = vadd.f32 %v917_v25, %v846_v3  ;;  %v1358_v27 = vpop.f32.mrb[14].mxu1  ;;  %1367 = vmatprep.mubr.msk.bf16.mxu0 %vm507_vm2, %v940_v22  ;;  %v1120_v25 = vpop.permute.xlu1 %1119 }
 0x487   : > { %v929_v28 = vadd.f32 %v1358_v27, %v846_v3  ;;  %v920_v30 = vpop.f32.mrb[15].mxu1  ;;  %1368 = vmatmul.mubr.msk.bf16.vlgmr.msra.gmra.mrb[16].mxu0 %vm507_vm2, %v941_v21  ;;  %v938_v33 = vmax.f32 %v926_v24, 0.0 }
 0x488   : > { %v921_v32 = vadd.f32 %v920_v30, %v846_v3  ;;  %v936_v36 = vmax.f32 %v918_v26, 0.0 }
 0x489   : > { %v939_v35 = vmax.f32 %v929_v28, 0.0 }
 0x48a   : > { %v937_v38 = vmax.f32 %v921_v32, 0.0 }
 0x48b   : > { %v943_v39 = vpack.c.bf16 %v939_v35, %v938_v33 }
 0x48c   : > { %v942_v40 = vpack.c.bf16 %v937_v38, %v936_v36 }
 0x48e   : > { %1371 = vmatprep.mubr.msk.bf16.mxu0 %vm507_vm2, %v942_v40 }
 0x48f   : > { %1372 = vmatmul.mubr.msk.bf16.gmra.mrb[20].mxu0 %vm507_vm2, %v943_v39 }
 0x55a   : > { %v1369_v53 = vpop.f32.mrb[16].mxu0 }
 0x55b   : > { %v1035_v55 = vadd.f32 %v1369_v53, %v955_v49  ;;  %v1026_v56 = vpop.f32.mrb[17].mxu0 }
 0x55c   : > { %v1027_v58 = vadd.f32 %v1026_v56, %v955_v49  ;;  %v1370_v59 = vpop.f32.mrb[18].mxu0 }
 0x55d   : > { %1422 = vtanh.f32 %v1035_v55  ;;  %v1038_v60 = vadd.f32 %v1370_v59, %v955_v49  ;;  %v1029_v61 = vpop.f32.mrb[19].mxu0 }
 0x55e   : > { %1424 = vtanh.f32 %v1027_v58  ;;  %v1030_v63 = vadd.f32 %v1029_v61, %v955_v49 }
 0x55f   : > { %1426 = vtanh.f32 %v1038_v60 }
 0x560   : > { %1428 = vtanh.f32 %v1030_v63 }
 0x562   : > { %v1373_v13 = vpop.f32.mrb[20].mxu0 }
 0x563   : > { %v1051_v29 = vadd.f32 %v1373_v13, %v955_v49  ;;  %v1042_v15 = vpop.f32.mrb[21].mxu0 }
 0x564   : > { %v1043_v34 = vadd.f32 %v1042_v15, %v955_v49  ;;  %v1374_v37 = vpop.f32.mrb[22].mxu0 }
 0x565   : > { %1430 = vtanh.f32 %v1051_v29  ;;  %v1054_v47 = vadd.f32 %v1374_v37, %v955_v49  ;;  %v1045_v51 = vpop.f32.mrb[23].mxu0 }
 0x566   : > { %1432 = vtanh.f32 %v1043_v34  ;;  %v1046_v57 = vadd.f32 %v1045_v51, %v955_v49 }
 0x567   : > { %v1423_v1 = vpop.eup %1422  ;;  %1434 = vtanh.f32 %v1054_v47 }
 0x568   : > { %v1425_v2 = vpop.eup %1424  ;;  %v1132_v5 = vsel %vm1129_vm5, %v1423_v1, %v1078_v43  ;;  %1436 = vtanh.f32 %v1046_v57 }
 0x569   : > { %v1427_v6 = vpop.eup %1426  ;;  %v1140_v7 = vsel %vm831_vm4, %v1132_v5, %v1110_v31  ;;  %v1130_v3 = vsel %vm1129_vm5, %v1425_v2, %v1074_v41 }
 0x56a   : > { %v1429_v4 = vpop.eup %1428  ;;  %1148 = vst.msk [vmem:[%s1708_s12 + $0x10] sm:$0xff] %vm377_vm1, %v1140_v7  ;;  %v1138_v9 = vsel %vm831_vm4, %v1130_v3, %v1106_v62  ;;  %v1133_v10 = vsel %vm1129_vm5, %v1427_v6, %v1080_v44 }
 0x56b   : > { %1146 = vst.msk [vmem:[%s1708_s12] sm:$0xff] %vm377_vm1, %v1138_v9  ;;  %v1141_v11 = vsel %vm831_vm4, %v1133_v10, %v1112_v54  ;;  %v1131_v12 = vsel %vm1129_vm5, %v1429_v4, %v1076_v42 }
 0x56c   : > { %1149 = vst.msk [vmem:[%s1708_s12 + $0x18] sm:$0xff] %vm377_vm1, %v1141_v11  ;;  %v1139_v16 = vsel %vm831_vm4, %v1131_v12, %v1108_v0 }
 0x56d   : > { %1147 = vst.msk [vmem:[%s1708_s12 + $0x8] sm:$0xff] %vm377_vm1, %v1139_v16 }
 0x56f   : > { %v1431_v17 = vpop.eup %1430 }
 0x570   : > { %v1433_v18 = vpop.eup %1432  ;;  %v1136_v20 = vsel %vm1129_vm5, %v1431_v17, %v1086_v50 }
 0x571   : > { %v1435_v21 = vpop.eup %1434  ;;  %v1144_v22 = vsel %vm831_vm4, %v1136_v20, %v1118_v19  ;;  %v1134_v23 = vsel %vm1129_vm5, %v1433_v18, %v1082_v45 }
 0x572   : > { %v1437_v24 = vpop.eup %1436  ;;  %1152 = vst.msk [vmem:[%s1708_s12 + $0x30] sm:$0xff] %vm377_vm1, %v1144_v22  ;;  %v1142_v26 = vsel %vm831_vm4, %v1134_v23, %v1114_v8  ;;  %v1137_v27 = vsel %vm1129_vm5, %v1435_v21, %v1088_v52 }
 0x573   : > { %1150 = vst.msk [vmem:[%s1708_s12 + $0x20] sm:$0xff] %vm377_vm1, %v1142_v26  ;;  %v1145_v28 = vsel %vm831_vm4, %v1137_v27, %v1120_v25  ;;  %v1135_v30 = vsel %vm1129_vm5, %v1437_v24, %v1700_v48 }
 0x574   : > { %1153 = vst.msk [vmem:[%s1708_s12 + $0x38] sm:$0xff] %vm377_vm1, %v1145_v28  ;;  %v1143_v32 = vsel %vm831_vm4, %v1135_v30, %v1116_v14 }
 0x575   : > { %1151 = vst.msk [vmem:[%s1708_s12 + $0x28] sm:$0xff] %vm377_vm1, %v1143_v32 }
 0x576 PF: > { %s18_s27 = sadd.s32 1, %s1444_s27  }
 0x577   : > { %p15_p4 = scmp.ge.s32.totalorder %s18_s27, 4  }
 0x579   :  { %17 = sbr.rel (!%p15_p4) target bundleno = 1 (0x1), region = 85 }

</bundles_post_ra>
